<compile_context>
chip_gen: v5e
topology: v5e:2x2
jax: 0.10.0
libtpu: 0.0.40
codegen_flags: <defaults>
</compile_context>

<pallas_src>
import jax
import jax.numpy as jnp
from jax.experimental import pallas as pl
from jax.experimental.pallas import tpu as pltpu


LANE = 128
SUBLANE = 8


def _round_up(n, m):
    return ((n + m - 1) // m) * m


def mlp_kernel(x_ref,
               w1_ref, b1_ref,
               w234_ref, b234_ref,
               w5_ref, b5_ref,
               o_ref):
    """Fused 5-layer MLP on a (tile_b, input_dim) batch tile.

    Weights arrive zero-padded to 128-lane multiples and pre-cast to bf16, so
    every matmul is a full, unmasked MXU tile with f32 accumulation.  Bias add
    and ReLU run in f32 on the VPU (v5e has no bf16 VPU datapath).
    """
    hp = w1_ref.shape[1]  # padded hidden width (multiple of 128)

    # fc1 + ReLU
    h = jnp.dot(x_ref[...].astype(jnp.bfloat16), w1_ref[...],
                preferred_element_type=jnp.float32)
    h = jnp.maximum(h + b1_ref[...], 0.0)

    # fc2, fc3, fc4 (+ ReLU) packed as one (hp, 3*hp) weight slab.
    # Static, 128-aligned slices of the refs -> no layout fix-up cost.
    for layer in range(3):
        w = w234_ref[:, layer * hp:(layer + 1) * hp]
        b = b234_ref[:, layer * hp:(layer + 1) * hp]
        h = jnp.dot(h.astype(jnp.bfloat16), w, preferred_element_type=jnp.float32)
        h = jnp.maximum(h + b, 0.0)

    # fc5 (no activation)
    h = jnp.dot(h.astype(jnp.bfloat16), w5_ref[...],
                preferred_element_type=jnp.float32) + b5_ref[...]

    o_ref[...] = h.astype(o_ref.dtype)


def pack_params(params):
    """Zero-pad to 128-lane multiples, cast weights to bf16, fuse fc2/3/4.

    Padded rows/cols are zero and biases' padded lanes are zero, so (with
    ReLU(0)=0) padded lanes contribute nothing and the math is unchanged.
    """
    input_dim, hidden_dim = params["w1"].shape
    output_dim = params["w5"].shape[1]
    hp = _round_up(hidden_dim, LANE)
    op = _round_up(output_dim, LANE)

    def pad2(a, rows, cols):
        return jnp.pad(a, ((0, rows - a.shape[0]), (0, cols - a.shape[1])))

    w1 = pad2(params["w1"], input_dim, hp).astype(jnp.bfloat16)
    b1 = pad2(params["b1"], 1, hp).astype(jnp.float32)
    w234 = jnp.concatenate([pad2(params[f"w{i}"], hp, hp) for i in (2, 3, 4)],
                           axis=1).astype(jnp.bfloat16)
    b234 = jnp.concatenate([pad2(params[f"b{i}"], 1, hp) for i in (2, 3, 4)],
                           axis=1).astype(jnp.float32)
    w5 = pad2(params["w5"], hp, op).astype(jnp.bfloat16)
    b5 = pad2(params["b5"], 1, op).astype(jnp.float32)

    return dict(w1=w1, b1=b1, w234=w234, b234=b234, w5=w5, b5=b5,
                input_dim=input_dim, hidden_pad=hp,
                output_dim=output_dim, output_pad=op)


def _pick_tile_b(batch_padded):
    """Largest of {512, 256, 128, 64, 32, 16, 8} that divides the padded batch."""
    for t in (512, 256, 128, 64, 32, 16, 8):
        if batch_padded % t == 0:
            return t
    return batch_padded  # unreachable: batch_padded is a multiple of 8


def net_forward(x, packed, *, tile_b=None):
    """Run the fused MLP. x: (B, input_dim) float. Returns (B, output_dim) f32."""
    B, input_dim = x.shape
    assert input_dim == packed["input_dim"]
    hp = packed["hidden_pad"]
    op = packed["output_pad"]
    out_dim = packed["output_dim"]

    # Pad the batch so it tiles cleanly into (tile_b, ...) sublane-aligned blocks.
    bp = _round_up(B, SUBLANE)
    if tile_b is None:
        tile_b = _pick_tile_b(bp)
    bp = _round_up(bp, tile_b)
    if bp != B:
        x = jnp.pad(x, ((0, bp - B), (0, 0)))
    x = x.astype(jnp.float32)

    grid = (bp // tile_b,)

    def const_spec(shape):
        # Full array, same block every grid step -> fetched once, stays resident.
        return pl.BlockSpec(shape, lambda i: (0, 0))

    in_specs = [
        pl.BlockSpec((tile_b, input_dim), lambda i: (i, 0)),   # x: tiled over batch
        const_spec(packed["w1"].shape), const_spec(packed["b1"].shape),
        const_spec(packed["w234"].shape), const_spec(packed["b234"].shape),
        const_spec(packed["w5"].shape), const_spec(packed["b5"].shape),
    ]
    out_specs = pl.BlockSpec((tile_b, op), lambda i: (i, 0))   # lane-dense 128-wide store

    weight_bytes = sum(int(packed[k].size) * packed[k].dtype.itemsize
                       for k in ("w1", "b1", "w234", "b234", "w5", "b5"))
    flops = 2 * bp * (input_dim * hp + 3 * hp * hp + hp * op)
    bytes_accessed = bp * (input_dim + op) * 4 + weight_bytes
    cost = pl.CostEstimate(flops=flops, transcendentals=0,
                           bytes_accessed=bytes_accessed)

    out = pl.pallas_call(
        mlp_kernel,
        out_shape=jax.ShapeDtypeStruct((bp, op), jnp.float32),
        grid_spec=pltpu.PrefetchScalarGridSpec(
            num_scalar_prefetch=0,
            grid=grid,
            in_specs=in_specs,
            out_specs=out_specs,
        ),
        compiler_params=pltpu.CompilerParams(
            dimension_semantics=("parallel",),
            vmem_limit_bytes=32 * 1024 * 1024,  # safe on v7x's 64 MiB physical VMEM
        ),
        cost_estimate=cost,
    )(x,
      packed["w1"], packed["b1"],
      packed["w234"], packed["b234"],
      packed["w5"], packed["b5"])

    return out[:B, :out_dim]


def init_params(key, input_dim, output_dim, hidden_dim=120):
    """Deterministic init mimicking nn.Linear's uniform(-1/sqrt(fan_in), 1/sqrt(fan_in))."""
    dims = [(input_dim, hidden_dim),
            (hidden_dim, hidden_dim),
            (hidden_dim, hidden_dim),
            (hidden_dim, hidden_dim),
            (hidden_dim, output_dim)]
    params = {}
    keys = jax.random.split(key, 2 * len(dims))
    for idx, (fan_in, fan_out) in enumerate(dims):
        bound = 1.0 / (fan_in ** 0.5)
        params[f"w{idx + 1}"] = jax.random.uniform(
            keys[2 * idx], (fan_in, fan_out),
            minval=-bound, maxval=bound, dtype=jnp.float32)
        params[f"b{idx + 1}"] = jax.random.uniform(
            keys[2 * idx + 1], (1, fan_out),
            minval=-bound, maxval=bound, dtype=jnp.float32)
    return params


def net_forward_ref(x, params):
    """Pure-JAX f32 reference for correctness check."""
    h = x
    for i in range(1, 5):
        h = jnp.maximum(h @ params[f"w{i}"] + params[f"b{i}"], 0.0)
    return h @ params["w5"] + params["b5"]


if __name__ == "__main__":
    key = jax.random.PRNGKey(0)
    k_param, k_x = jax.random.split(key)

    batch = 16
    input_dim = 32
    output_dim = 16
    hidden_dim = 120

    params = init_params(k_param, input_dim, output_dim, hidden_dim)
    packed = pack_params(params)
    x = jax.random.normal(k_x, (batch, input_dim), dtype=jnp.float32)

    # tile_b=8 -> grid of 2 steps even at this small demo batch (exercises the
    # pipelined / multi-tile path; at large B the wrapper picks up to 512).
    out = net_forward(x, packed, tile_b=8)
    out = jax.block_until_ready(out)

    ref = net_forward_ref(x, params)
    assert out.shape == (batch, output_dim)
    # bf16 matmul inputs (f32 accumulate) -> loose tolerance vs. the f32 reference.
    assert jnp.allclose(out, ref, atol=5e-2, rtol=5e-2), "mismatch vs JAX reference"

    print("KERNEL_OK")
</pallas_src>

<mosaic_0001>
module attributes {stable_mosaic.version = 11 : i64} {
  func.func @mlp_kernel(%arg0: i32, %arg1: memref<8x32xf32, #tpu.memory_space<vmem>>, %arg2: memref<32x128xbf16, #tpu.memory_space<vmem>>, %arg3: memref<1x128xf32, #tpu.memory_space<vmem>>, %arg4: memref<128x384xbf16, #tpu.memory_space<vmem>>, %arg5: memref<1x384xf32, #tpu.memory_space<vmem>>, %arg6: memref<128x128xbf16, #tpu.memory_space<vmem>>, %arg7: memref<1x128xf32, #tpu.memory_space<vmem>>, %arg8: memref<8x128xf32, #tpu.memory_space<vmem>>) attributes {dimension_semantics = [#tpu.dimension_semantics<parallel>], iteration_bounds = array<i64: 2>, scalar_prefetch = 0 : i64, scratch_operands = 0 : i64, tpu.core_type = #tpu.core_type<tc>, window_params = [{transform_indices = @transform_0, window_bounds = array<i64: 8, 32>}, {pipeline_mode = #tpu.pipeline_mode<synchronous>, transform_indices = @transform_1, window_bounds = array<i64: 32, 128>}, {pipeline_mode = #tpu.pipeline_mode<synchronous>, transform_indices = @transform_2, window_bounds = array<i64: 1, 128>}, {pipeline_mode = #tpu.pipeline_mode<synchronous>, transform_indices = @transform_3, window_bounds = array<i64: 128, 384>}, {pipeline_mode = #tpu.pipeline_mode<synchronous>, transform_indices = @transform_4, window_bounds = array<i64: 1, 384>}, {pipeline_mode = #tpu.pipeline_mode<synchronous>, transform_indices = @transform_5, window_bounds = array<i64: 128, 128>}, {pipeline_mode = #tpu.pipeline_mode<synchronous>, transform_indices = @transform_6, window_bounds = array<i64: 1, 128>}, {transform_indices = @transform_7, window_bounds = array<i64: 8, 128>}]} {
    %c0 = arith.constant 0 : index
    %c0_0 = arith.constant 0 : index
    %0 = vector.load %arg1[%c0, %c0_0] : memref<8x32xf32, #tpu.memory_space<vmem>>, vector<8x32xf32>
    %1 = arith.truncf %0 : vector<8x32xf32> to vector<8x32xbf16>
    %c0_1 = arith.constant 0 : index
    %c0_2 = arith.constant 0 : index
    %2 = vector.load %arg2[%c0_1, %c0_2] : memref<32x128xbf16, #tpu.memory_space<vmem>>, vector<32x128xbf16>
    %cst = arith.constant dense<0.000000e+00> : vector<8x128xf32>
    %3 = tpu.matmul %1, %2, %cst {dimension_numbers = #tpu.dot_dimension_numbers<[1], [0], [0], [1], [0, 0, 1, 1], [], []>} : vector<8x32xbf16>, vector<32x128xbf16>, vector<8x128xf32> -> vector<8x128xf32>
    %c0_3 = arith.constant 0 : index
    %c0_4 = arith.constant 0 : index
    %4 = vector.load %arg3[%c0_3, %c0_4] : memref<1x128xf32, #tpu.memory_space<vmem>>, vector<1x128xf32>
    %5 = vector.broadcast %4 : vector<1x128xf32> to vector<8x128xf32>
    %6 = arith.addf %3, %5 : vector<8x128xf32>
    %cst_5 = arith.constant 0.000000e+00 : f32
    %7 = vector.broadcast %cst_5 : f32 to vector<8x128xf32>
    %8 = arith.maximumf %6, %7 : vector<8x128xf32>
    %c0_6 = arith.constant 0 : index
    %c0_7 = arith.constant 0 : index
    %9 = vector.load %arg4[%c0_6, %c0_7] : memref<128x384xbf16, #tpu.memory_space<vmem>>, vector<128x128xbf16>
    %c0_8 = arith.constant 0 : index
    %c0_9 = arith.constant 0 : index
    %10 = vector.load %arg5[%c0_8, %c0_9] : memref<1x384xf32, #tpu.memory_space<vmem>>, vector<1x128xf32>
    %11 = arith.truncf %8 : vector<8x128xf32> to vector<8x128xbf16>
    %cst_10 = arith.constant dense<0.000000e+00> : vector<8x128xf32>
    %12 = tpu.matmul %11, %9, %cst_10 {dimension_numbers = #tpu.dot_dimension_numbers<[1], [0], [0], [1], [0, 0, 1, 1], [], []>} : vector<8x128xbf16>, vector<128x128xbf16>, vector<8x128xf32> -> vector<8x128xf32>
    %13 = vector.broadcast %10 : vector<1x128xf32> to vector<8x128xf32>
    %14 = arith.addf %12, %13 : vector<8x128xf32>
    %cst_11 = arith.constant 0.000000e+00 : f32
    %15 = vector.broadcast %cst_11 : f32 to vector<8x128xf32>
    %16 = arith.maximumf %14, %15 : vector<8x128xf32>
    %c0_12 = arith.constant 0 : index
    %c128 = arith.constant 128 : index
    %17 = vector.load %arg4[%c0_12, %c128] : memref<128x384xbf16, #tpu.memory_space<vmem>>, vector<128x128xbf16>
    %c0_13 = arith.constant 0 : index
    %c128_14 = arith.constant 128 : index
    %18 = vector.load %arg5[%c0_13, %c128_14] : memref<1x384xf32, #tpu.memory_space<vmem>>, vector<1x128xf32>
    %19 = arith.truncf %16 : vector<8x128xf32> to vector<8x128xbf16>
    %cst_15 = arith.constant dense<0.000000e+00> : vector<8x128xf32>
    %20 = tpu.matmul %19, %17, %cst_15 {dimension_numbers = #tpu.dot_dimension_numbers<[1], [0], [0], [1], [0, 0, 1, 1], [], []>} : vector<8x128xbf16>, vector<128x128xbf16>, vector<8x128xf32> -> vector<8x128xf32>
    %21 = vector.broadcast %18 : vector<1x128xf32> to vector<8x128xf32>
    %22 = arith.addf %20, %21 : vector<8x128xf32>
    %cst_16 = arith.constant 0.000000e+00 : f32
    %23 = vector.broadcast %cst_16 : f32 to vector<8x128xf32>
    %24 = arith.maximumf %22, %23 : vector<8x128xf32>
    %c0_17 = arith.constant 0 : index
    %c256 = arith.constant 256 : index
    %25 = vector.load %arg4[%c0_17, %c256] : memref<128x384xbf16, #tpu.memory_space<vmem>>, vector<128x128xbf16>
    %c0_18 = arith.constant 0 : index
    %c256_19 = arith.constant 256 : index
    %26 = vector.load %arg5[%c0_18, %c256_19] : memref<1x384xf32, #tpu.memory_space<vmem>>, vector<1x128xf32>
    %27 = arith.truncf %24 : vector<8x128xf32> to vector<8x128xbf16>
    %cst_20 = arith.constant dense<0.000000e+00> : vector<8x128xf32>
    %28 = tpu.matmul %27, %25, %cst_20 {dimension_numbers = #tpu.dot_dimension_numbers<[1], [0], [0], [1], [0, 0, 1, 1], [], []>} : vector<8x128xbf16>, vector<128x128xbf16>, vector<8x128xf32> -> vector<8x128xf32>
    %29 = vector.broadcast %26 : vector<1x128xf32> to vector<8x128xf32>
    %30 = arith.addf %28, %29 : vector<8x128xf32>
    %cst_21 = arith.constant 0.000000e+00 : f32
    %31 = vector.broadcast %cst_21 : f32 to vector<8x128xf32>
    %32 = arith.maximumf %30, %31 : vector<8x128xf32>
    %33 = arith.truncf %32 : vector<8x128xf32> to vector<8x128xbf16>
    %c0_22 = arith.constant 0 : index
    %c0_23 = arith.constant 0 : index
    %34 = vector.load %arg6[%c0_22, %c0_23] : memref<128x128xbf16, #tpu.memory_space<vmem>>, vector<128x128xbf16>
    %cst_24 = arith.constant dense<0.000000e+00> : vector<8x128xf32>
    %35 = tpu.matmul %33, %34, %cst_24 {dimension_numbers = #tpu.dot_dimension_numbers<[1], [0], [0], [1], [0, 0, 1, 1], [], []>} : vector<8x128xbf16>, vector<128x128xbf16>, vector<8x128xf32> -> vector<8x128xf32>
    %c0_25 = arith.constant 0 : index
    %c0_26 = arith.constant 0 : index
    %36 = vector.load %arg7[%c0_25, %c0_26] : memref<1x128xf32, #tpu.memory_space<vmem>>, vector<1x128xf32>
    %37 = vector.broadcast %36 : vector<1x128xf32> to vector<8x128xf32>
    %38 = arith.addf %35, %37 : vector<8x128xf32>
    %c0_27 = arith.constant 0 : index
    %c0_28 = arith.constant 0 : index
    %39 = vector.load %arg8[%c0_27, %c0_28] : memref<8x128xf32, #tpu.memory_space<vmem>>, vector<8x128xf32>
    tpu.vector_store %arg8[%c0_27, %c0_28], %38 {strides = array<i32>} : memref<8x128xf32, #tpu.memory_space<vmem>>, vector<8x128xf32>,
    return
  }
  func.func @transform_0(%arg0: i32) -> (i32, i32) {
    %c0_i32 = arith.constant 0 : i32
    %c0_i32_0 = arith.constant 0 : i32
    return %arg0, %c0_i32 : i32, i32
  }
  func.func @transform_1(%arg0: i32) -> (i32, i32) {
    %c0_i32 = arith.constant 0 : i32
    %c0_i32_0 = arith.constant 0 : i32
    %c0_i32_1 = arith.constant 0 : i32
    return %c0_i32, %c0_i32_0 : i32, i32
  }
  func.func @transform_2(%arg0: i32) -> (i32, i32) {
    %c0_i32 = arith.constant 0 : i32
    %c0_i32_0 = arith.constant 0 : i32
    %c0_i32_1 = arith.constant 0 : i32
    return %c0_i32, %c0_i32_0 : i32, i32
  }
  func.func @transform_3(%arg0: i32) -> (i32, i32) {
    %c0_i32 = arith.constant 0 : i32
    %c0_i32_0 = arith.constant 0 : i32
    %c0_i32_1 = arith.constant 0 : i32
    return %c0_i32, %c0_i32_0 : i32, i32
  }
  func.func @transform_4(%arg0: i32) -> (i32, i32) {
    %c0_i32 = arith.constant 0 : i32
    %c0_i32_0 = arith.constant 0 : i32
    %c0_i32_1 = arith.constant 0 : i32
    return %c0_i32, %c0_i32_0 : i32, i32
  }
  func.func @transform_5(%arg0: i32) -> (i32, i32) {
    %c0_i32 = arith.constant 0 : i32
    %c0_i32_0 = arith.constant 0 : i32
    %c0_i32_1 = arith.constant 0 : i32
    return %c0_i32, %c0_i32_0 : i32, i32
  }
  func.func @transform_6(%arg0: i32) -> (i32, i32) {
    %c0_i32 = arith.constant 0 : i32
    %c0_i32_0 = arith.constant 0 : i32
    %c0_i32_1 = arith.constant 0 : i32
    return %c0_i32, %c0_i32_0 : i32, i32
  }
  func.func @transform_7(%arg0: i32) -> (i32, i32) {
    %c0_i32 = arith.constant 0 : i32
    %c0_i32_0 = arith.constant 0 : i32
    return %arg0, %c0_i32 : i32, i32
  }
}

</mosaic_0001>

<bundles_post_ra>
// kernel: tpu_custom_call.1
= control target key start
LH: loop header
LB: loop body
LE: loop exit
PB: predicated region body
PF: predicated region fallthrough
CT: control target
= control target key end

     0   :  { %s1601_s0 = inlined_call_operand.hbm [shape: f32[16,32], index: 0, kind: input, shape index: {}]   ;;  %s1602_s1 = inlined_call_operand.hbm [shape: bf16[32,128], index: 1, kind: input, shape index: {}]   ;;  %s1603_s2 = inlined_call_operand.hbm [shape: f32[1,128], index: 2, kind: input, shape index: {}]   ;;  %s1604_s3 = inlined_call_operand.hbm [shape: bf16[128,384], index: 3, kind: input, shape index: {}]   ;;  %s1605_s4 = inlined_call_operand.vmem [shape: f32[1,384], index: 4, kind: input, shape index: {}]   ;;  %s1606_s5 = inlined_call_operand.hbm [shape: bf16[128,128], index: 5, kind: input, shape index: {}]   ;;  %s1607_s6 = inlined_call_operand.vmem [shape: f32[1,128], index: 6, kind: input, shape index: {}]   ;;  %s1608_s7 = inlined_call_operand.hbm [shape: f32[16,128], index: 7, kind: output, shape index: {}]  }
   0x1   :  { %1609 = sst [smem:[#allocation16_spill]] %s1602_s1 }
   0x2   :  { %1610 = sst [smem:[#allocation17_spill]] %s1603_s2 }
   0x3   :  { %12 = vsyncpa [#allocation3], 0 }
   0x4   :  { %14 = vsyncpa [#allocation3 + $0x1], 0 }
   0x5   :  { %15 = vsyncpa [#allocation6], 0 }
   0x6   :  { %16 = vsyncpa [#allocation9], 0 }
   0x7   :  { %17 = vsyncpa [#allocation4], 0 }
   0x8   :  { %19 = vsyncpa [#allocation4 + $0x1], 0  ;;  %s1418_s24 = smov 0   ;;  %s1420_s25 = smov 0  }
   0x9   :  { %s1422_s26 = smov 0   ;;  %s1424_s27 = smov 0  }
   0xa LB: > { %s1611_s1 = sld [smem:[#allocation16_spill]]  ;;  %s1442_s8 = sadd.s32 4294967295, %s1368_s27   ;;  %s1368_s27 = sphi %s1424_s27, %s1624_s27   ;;  %s1364_s26 = sphi %s1422_s26, %s1623_s26   ;;  %s1360_s25 = sphi %s1420_s25, %s1622_s25   ;;  %s1356_s24 = sphi %s1418_s24, %s1621_s24  }
   0xb   : > { %p858_p0 = scmp.ge.s32.totalorder %s1368_s27, 1  ;;  %p46_p1 = scmp.eq.s32.totalorder %s1442_s8, 0 }
   0xc   : > { %p208_p2 = scmp.lt.s32.totalorder %s1368_s27, 3  ;;  %s1370_s10 = smov [#allocation5]  }
   0xd   : > { %s221_s11 = sshll.u32 %s1370_s10, 4  ;;  %s245_s14 = sshll.u32 %s1604_s3, 4  ;;  %s222_s11 = int_to_ptr.vmem [resolvable:$true] %s221_s11  ;;  %s246_s14 = int_to_ptr.hbm [resolvable:$true] %s245_s14 }
   0xe   : > { %p1447_p3 = pnand %p858_p0, %p208_p2  ;;  %s1371_s16 = smov [#allocation8]  }
   0xf   : > { %s247_s17 = sshll.u32 %s1371_s16, 4  ;;  %s1372_s18 = smov 64   ;;  %s248_s17 = int_to_ptr.vmem [resolvable:$true] %s247_s17 }
  0x10   : > { %s219_s30 = sshll.u32 %s1611_s1, 4  ;;  %p1068_p4 = pneg %p1447_p3  ;;  %s220_s30 = int_to_ptr.hbm [resolvable:$true] %s219_s30 }
  0x11   : > { %s1373_s19 = smov 4   ;;  %s1374_s20 = smov 192  }
  0x12   : > { %p1459_p6 = pnand %p1068_p4, %p46_p1  ;;  %s1375_s21 = smov 12  }
  0x13   : > { %s1614_s2 = sld [smem:[#allocation17_spill]]  ;;  %s1376_s29 = smov [#allocation7]  }
  0x14   : > { %1071 = dma.hbm_to_vmem [thread:$0]  (!%p1459_p6), %s220_s30, 256, %s222_s11, [#allocation6], %s1372_s18, %s1372_s18, %s1373_s19  }
  0x15   : > { %1077 = dma.hbm_to_vmem [thread:$0]  (!%p1459_p6), %s246_s14, 3072, %s248_s17, [#allocation9], %s1374_s20, %s1374_s20, %s1375_s21  }
  0x16   : > { %s236_s30 = sshll.u32 %s1376_s29, 4  ;;  %s262_s12 = sshll.u32 %s1606_s5, 4  ;;  %s237_s30 = int_to_ptr.vmem [resolvable:$true] %s236_s30  ;;  %s263_s12 = int_to_ptr.hbm [resolvable:$true] %s262_s12 }
  0x17   : > { %s1377_s13 = smov [#allocation10]   ;;  %s857_s16 = sadd.s32 4294967294, %s1368_s27  }
  0x18   : > { %s264_s14 = sshll.u32 %s1377_s13, 4  ;;  %s1479_s17 = sadd.s32 1, %s1368_s27   ;;  %s265_s14 = int_to_ptr.vmem [resolvable:$true] %s264_s14 }
  0x19   : > { %s234_s28 = sshll.u32 %s1614_s2, 4  ;;  %s29_s20 = ssub.s32 %s1368_s27, %s1479_s17  ;;  %s235_s28 = int_to_ptr.hbm [resolvable:$true] %s234_s28 }
  0x1a   : > { %1074 = dma.hbm_to_vmem [thread:$0]  (!%p1459_p6), %s235_s28, 16, %s237_s30, [#allocation6]  }
  0x1b   : > { %1080 = dma.hbm_to_vmem [thread:$0]  (!%p1459_p6), %s263_s12, 1024, %s265_s14, [#allocation9], %s1372_s18, %s1372_s18, %s1373_s19  }
  0x1c   : > { %s32_s21 = sadd.s32 1, %s1364_s26  ;;  %p30_p7 = scmp.eq.s32.totalorder %s29_s20, 0 }
  0x1d   : > { %p39_p8 = scmp.ne.s32.totalorder %s1364_s26, %s1360_s25  ;;  %p40_p9 = scmp.eq.s32.totalorder %s1368_s27, 0 }
  0x1e   : > { %p45_p10 = scmp.ne.s32.totalorder %s1360_s25, %s1356_s24  ;;  %p195_p13 = scmp.eq.s32.totalorder %s1442_s8, 1 }
  0x1f   : > { %s1490_s22 = scalar_select %p30_p7, %s1364_s26, %s32_s21  }
  0x20   : > { %p1492_p11 = por %p40_p9, %p39_p8  ;;  %p1498_p12 = por %p46_p1, %p45_p10 }
  0x21   : > { %p201_p0 = scmp.eq.s32.totalorder %s857_s16, 1  ;;  %p1093_p2 = scmp.lt.s32.totalorder %s1368_s27, 2 }
  0x22   : > { %s281_s18 = sand.u32 1, %s1364_s26   ;;  %p1505_p4 = por %p195_p13, %p39_p8 }
  0x23   : > { %p1509_p6 = por %p201_p0, %p45_p10  ;;  %s864_s29 = sshll.u32 %s281_s18, 3 }
  0x24   : > { %s865_s30 = sshll.u32 %s1368_s27, 3  ;;  %s285_s13 = scalar_lea.vmem [#allocation2], %s864_s29 }
  0x25   : > { %s289_s12 = scalar_lea.hbm %s1601_s0, %s865_s30  ;;  %s293_s14 = sshll.u32 %s285_s13, 4  ;;  %s294_s14 = int_to_ptr.vmem [resolvable:$true] %s293_s14 }
  0x26   : > { %s291_s20 = sshll.u32 %s289_s12, 4  ;;  %p1519_p7 = pnand %p1093_p2, %p1492_p11  ;;  %s292_s20 = int_to_ptr.hbm [resolvable:$true] %s291_s20 }
  0x27   : > { %s282_s21 = scalar_lea.sflag [#allocation3], %s281_s18  ;;  %s1264_s1 = sshra.s32 %s292_s20, 4  ;;  %s1265_s1 = int_to_ptr.hbm [resolvable:$true] %s1264_s1 }
  0x28   : > { %s1266_s2 = scalar_lea.hbm %s1265_s1, 8  ;;  %p1268_p9 = pneg %p1519_p7 }
  0x29   : > { %p1267_p8 = scmp.ne.s32.totalorder %s1265_s1, %s1266_s2  ;;  %s1271_s10 = scalar_lea.hbm %s1601_s0, 16 }
  0x2a   : > { %p1272_p11 = scmp.lt.s32.totalorder %s1265_s1, %s1601_s0  ;;  %p1273_p0 = scmp.lt.s32.totalorder %s1271_s10, %s1266_s2 }
  0x2b   : > { %p1269_p10 = pnand %p1268_p9, %p1267_p8 }
  0x2c   : > { %p1274_p2 = por %p1273_p0, %p1272_p11 }
  0x2d   : > { %p1270_p13 = pneg %p1269_p10 }
  0x2f   : > { %p1275_p5 = pnand %p1274_p2, %p1270_p13 }
  0x31   : > { %1278 = shalt.err (!%p1275_p5)
}
  0x32   : > { %1084 = dma.hbm_to_vmem [thread:$0]  (!%p1519_p7), %s292_s20, 128, %s294_s14, %s282_s21  }
  0x33   : > { %302 = sbr.rel (%p1447_p3) target bundleno = 743 (0x2e7), region = 48  ;;  %s1536_s18 = sand.u32 (!%p1447_p3), 1, %s1360_s25  }
  0x34   : > { %s867_s12 = sshll.u32 (!%p1447_p3), %s1536_s18, 3  ;;  %s305_s13 = scalar_lea.sflag (!%p1447_p3), [#allocation3], %s1536_s18 }
  0x35   : > { %s308_s1 = scalar_lea.vmem (!%p1447_p3), [#allocation2], %s867_s12 }
  0x38   : > { %1339 = dma.done.wait (%p1498_p12), %s305_s13, 128  }
  0x39   : > { %1341 = vsyncadd (%p1498_p12), %s305_s13, 4294967168 }
  0x3a   : > { %1343 = dma.done.wait (%p46_p1), [#allocation6], 272  }
  0x3b   : > { %1345 = vsyncadd (%p46_p1), [#allocation6], 4294967024 }
  0x3c   : > { %1347 = dma.done.wait (%p46_p1), [#allocation9], 4096  }
  0x3d   : > { %1349 = vsyncadd (%p46_p1), [#allocation9], 4294963200  ;;  %v1015_v0 = vld [vmem:[#allocation5 + $0x8] sm:$0xff]  ;;  %v912_v1 = vld [vmem:[#allocation8 + $0xa8] sm:$0xf]  ;;  %vm383_vm0 = vcmask 261120  }
  0x3e   : > { %v1023_v2 = vld [vmem:[#allocation8 + $0xb0] sm:$0xf0]  ;;  %v908_v3 = vld [vmem:[#allocation8 + $0x90] sm:$0xf]  ;;  %393 = vmatpush.bf16.msra.mxu0 %v1015_v0  ;;  %v361_v5 = vld [vmem:[%s308_s1] sm:$0xff]  ;;  %s1011_s21 = sshll.u32 %s1442_s8, 3 }
  0x3f   : > { %v1014_v4 = vld [vmem:[#allocation5] sm:$0xff]  ;;  %v913_v6 = vor.u32 %v1023_v2, %v912_v1  ;;  %v1022_v7 = vld [vmem:[#allocation8 + $0x98] sm:$0xf0]  ;;  %v904_v9 = vld [vmem:[#allocation8 + $0x78] sm:$0xf]  ;;  %v362_v10 = vpack.c.bf16 %v361_v5, %v361_v5  ;;  %s744_s10 = scalar_lea.hbm %s1608_s7, %s1011_s21  ;;  %s359_s13 = scalar_lea.vmem [#allocation11], %s867_s12 }
  0x40   : > { %v909_v8 = vor.u32 %v1022_v7, %v908_v3  ;;  %v1021_v11 = vld [vmem:[#allocation8 + $0x80] sm:$0xf0]  ;;  %v900_v13 = vld [vmem:[#allocation8 + $0x60] sm:$0xf]  ;;  %v1020_v14 = vld [vmem:[#allocation8 + $0x68] sm:$0xf0] }
  0x41   : > { %470 = vmatpush.bf16.msra.mxu1 %v913_v6  ;;  %v905_v12 = vor.u32 %v1021_v11, %v904_v9  ;;  %v901_v15 = vor.u32 %v1020_v14, %v900_v13  ;;  %v896_v16 = vld [vmem:[#allocation8 + $0x48] sm:$0xf]  ;;  %v1019_v17 = vld [vmem:[#allocation8 + $0x50] sm:$0xf0]  ;;  %v892_v19 = vld [vmem:[#allocation8 + $0x30] sm:$0xf] }
  0x42   : > { %394 = vmatpush.bf16.msra.mxu0 %v1014_v4  ;;  %v897_v18 = vor.u32 %v1019_v17, %v896_v16  ;;  %v1018_v20 = vld [vmem:[#allocation8 + $0x38] sm:$0xf0]  ;;  %v888_v22 = vld [vmem:[#allocation8 + $0x18] sm:$0xf]  ;;  %v1017_v23 = vld [vmem:[#allocation8 + $0x20] sm:$0xf0] }
  0x43   : > { %v893_v21 = vor.u32 %v1018_v20, %v892_v19  ;;  %v889_v24 = vor.u32 %v1017_v23, %v888_v22  ;;  %v884_v25 = vld [vmem:[#allocation8] sm:$0xf]  ;;  %v1016_v26 = vld [vmem:[#allocation8 + $0x8] sm:$0xf0]  ;;  %v1031_v29 = vld [vmem:[#allocation8 + $0xb4] sm:$0xf0] }
  0x44   : > { %v885_v27 = vor.u32 %v1016_v26, %v884_v25  ;;  %v944_v28 = vld [vmem:[#allocation8 + $0xac] sm:$0xf]  ;;  %v940_v30 = vld [vmem:[#allocation8 + $0x94] sm:$0xf]  ;;  %v1030_v32 = vld [vmem:[#allocation8 + $0x9c] sm:$0xf0] }
  0x45   : > { %471 = vmatpush.bf16.msra.mxu1 %v909_v8  ;;  %881 = vmatmul.msk.bf16.vlgmr.msra.gmra.mxu0 %vm383_vm0, %v362_v10  ;;  %v945_v31 = vor.u32 %v1031_v29, %v944_v28  ;;  %v941_v33 = vor.u32 %v1030_v32, %v940_v30  ;;  %v936_v34 = vld [vmem:[#allocation8 + $0x7c] sm:$0xf]  ;;  %v1029_v35 = vld [vmem:[#allocation8 + $0x84] sm:$0xf0]  ;;  %v932_v37 = vld [vmem:[#allocation8 + $0x64] sm:$0xf] }
  0x46   : > { %v937_v36 = vor.u32 %v1029_v35, %v936_v34  ;;  %v1028_v38 = vld [vmem:[#allocation8 + $0x6c] sm:$0xf0]  ;;  %v928_v40 = vld [vmem:[#allocation8 + $0x4c] sm:$0xf]  ;;  %v1027_v41 = vld [vmem:[#allocation8 + $0x54] sm:$0xf0] }
  0x47   : > { %553 = vmatpush.bf16.msra.mxu2 %v945_v31  ;;  %v933_v39 = vor.u32 %v1028_v38, %v932_v37  ;;  %v929_v42 = vor.u32 %v1027_v41, %v928_v40  ;;  %v924_v43 = vld [vmem:[#allocation8 + $0x34] sm:$0xf]  ;;  %v1026_v44 = vld [vmem:[#allocation8 + $0x3c] sm:$0xf0]  ;;  %v1139_v46 = vld [vmem:[#allocation7] ss:$0 sm:$0xff] }
  0x48   : > { %v925_v45 = vor.u32 %v1026_v44, %v924_v43  ;;  %v920_v52 = vld [vmem:[#allocation8 + $0x1c] sm:$0xf]  ;;  %v1025_v53 = vld [vmem:[#allocation8 + $0x24] sm:$0xf0]  ;;  %v916_v55 = vld [vmem:[#allocation8 + $0x4] sm:$0xf] }
  0x49   : > { %472 = vmatpush.bf16.msra.mxu1 %v905_v12  ;;  %v921_v54 = vor.u32 %v1025_v53, %v920_v52  ;;  %v1024_v56 = vld [vmem:[#allocation8 + $0xc] sm:$0xf0]  ;;  %v1039_v59 = vld [vmem:[#allocation8 + $0xb8] sm:$0xf0]  ;;  %v972_v60 = vld [vmem:[#allocation8 + $0x98] sm:$0xf] }
  0x4a   : > { %v917_v57 = vor.u32 %v1024_v56, %v916_v55  ;;  %v976_v58 = vld [vmem:[#allocation8 + $0xb0] sm:$0xf]  ;;  %v1038_v62 = vld [vmem:[#allocation8 + $0xa0] sm:$0xf0]  ;;  %v968_v0 = vld [vmem:[#allocation8 + $0x80] sm:$0xf] }
  0x4b   : > { %554 = vmatpush.bf16.msra.mxu2 %v941_v33  ;;  %v977_v61 = vor.u32 %v1039_v59, %v976_v58  ;;  %v973_v63 = vor.u32 %v1038_v62, %v972_v60  ;;  %v1037_v1 = vld [vmem:[#allocation8 + $0x88] sm:$0xf0]  ;;  %v964_v3 = vld [vmem:[#allocation8 + $0x68] sm:$0xf]  ;;  %v1036_v4 = vld [vmem:[#allocation8 + $0x70] sm:$0xf0] }
  0x4c   : > { %v969_v2 = vor.u32 %v1037_v1, %v968_v0  ;;  %v965_v5 = vor.u32 %v1036_v4, %v964_v3  ;;  %v960_v6 = vld [vmem:[#allocation8 + $0x50] sm:$0xf]  ;;  %v1035_v7 = vld [vmem:[#allocation8 + $0x58] sm:$0xf0]  ;;  %v956_v9 = vld [vmem:[#allocation8 + $0x38] sm:$0xf] }
  0x4d   : > { %473 = vmatpush.bf16.msra.mxu1 %v901_v15  ;;  %636 = vmatpush.bf16.msra.mxu3 %v977_v61  ;;  %v961_v8 = vor.u32 %v1035_v7, %v960_v6  ;;  %v1034_v10 = vld [vmem:[#allocation8 + $0x40] sm:$0xf0]  ;;  %v1140_v12 = vld [vmem:[%s1605_s4] ss:$0 sm:$0xff]  ;;  %v1033_v19 = vld [vmem:[#allocation8 + $0x28] sm:$0xf0] }
  0x4e   : > { %v957_v11 = vor.u32 %v1034_v10, %v956_v9  ;;  %v1032_v22 = vld [vmem:[#allocation8 + $0x10] sm:$0xf0]  ;;  %v1045_v26 = vld [vmem:[#allocation10 + $0x28] sm:$0xff]  ;;  %v1043_v28 = vld [vmem:[#allocation10 + $0x18] sm:$0xff]  ;;  %s746_s1 = sshll.u32 %s359_s13, 4  ;;  %s748_s2 = sshll.u32 %s744_s10, 4  ;;  %s747_s1 = int_to_ptr.vmem [resolvable:$true] %s746_s1  ;;  %s749_s2 = int_to_ptr.hbm [resolvable:$true] %s748_s2 }
  0x4f   : > { %555 = vmatpush.bf16.msra.mxu2 %v937_v36  ;;  %v1046_v25 = vld [vmem:[#allocation10 + $0x30] sm:$0xff]  ;;  %v1141_v30 = vld [vmem:[%s1605_s4 + $0x1] ss:$0 sm:$0xff]  ;;  %v1041_v36 = vld [vmem:[#allocation10 + $0x8] sm:$0xff]  ;;  %s734_s9 = scalar_lea.sflag [#allocation4], %s1536_s18  ;;  %s1308_s8 = sshra.s32 %s749_s2, 4  ;;  %s1309_s8 = int_to_ptr.hbm [resolvable:$true] %s1308_s8 }
  0x50   : > { %v1042_v29 = vld [vmem:[#allocation10 + $0x10] sm:$0xff]  ;;  %v1040_v37 = vld [vmem:[#allocation10] sm:$0xff]  ;;  %v1143_v44 = vld [vmem:[%s1607_s6] ss:$0 sm:$0xff]  ;;  %s1310_s15 = scalar_lea.hbm %s1309_s8, 8  ;;  %s1314_s16 = scalar_lea.hbm %s1608_s7, 16 }
  0x51   : > { %474 = vmatpush.bf16.msra.mxu1 %v897_v18  ;;  %637 = vmatpush.bf16.msra.mxu3 %v973_v63  ;;  %v952_v18 = vld [vmem:[#allocation8 + $0x20] sm:$0xf]  ;;  %p1311_p1 = scmp.ne.s32.totalorder %s1309_s8, %s1310_s15  ;;  %p1315_p12 = scmp.lt.s32.totalorder %s1309_s8, %s1608_s7 }
  0x52   : > { %v953_v20 = vor.u32 %v1033_v19, %v952_v18  ;;  %v1142_v38 = vld [vmem:[%s1605_s4 + $0x2] ss:$0 sm:$0xff]  ;;  %p1316_p7 = scmp.lt.s32.totalorder %s1314_s16, %s1310_s15 }
  0x53   : > { %556 = vmatpush.bf16.msra.mxu2 %v933_v39  ;;  %p1312_p3 = pnand %p1311_p1, %p1505_p4 }
  0x54   : > { %p1317_p8 = por %p1316_p7, %p1315_p12 }
  0x55   : > { %475 = vmatpush.bf16.msra.mxu1 %v893_v21  ;;  %638 = vmatpush.bf16.msra.mxu3 %v969_v2  ;;  %v948_v21 = vld [vmem:[#allocation8 + $0x8] sm:$0xf]  ;;  %p1313_p5 = pneg %p1312_p3 }
  0x56   : > { %v949_v23 = vor.u32 %v1032_v22, %v948_v21 }
  0x57   : > { %557 = vmatpush.bf16.msra.mxu2 %v929_v42  ;;  %p1318_p9 = pnand %p1317_p8, %p1313_p5 }
  0x59   : > { %476 = vmatpush.bf16.msra.mxu1 %v889_v24  ;;  %639 = vmatpush.bf16.msra.mxu3 %v965_v5  ;;  %v1047_v24 = vld [vmem:[#allocation10 + $0x38] sm:$0xff] }
  0x5a   : > { %719 = vmatpush.bf16.msrb.mxu0 %v1047_v24 }
  0x5b   : > { %558 = vmatpush.bf16.msra.mxu2 %v925_v45 }
  0x5d   : > { %477 = vmatpush.bf16.msra.mxu1 %v885_v27  ;;  %640 = vmatpush.bf16.msra.mxu3 %v961_v8  ;;  %v1044_v27 = vld [vmem:[#allocation10 + $0x20] sm:$0xff] }
  0x5e   : > { %720 = vmatpush.bf16.msrb.mxu0 %v1046_v25 }
  0x5f   : > { %559 = vmatpush.bf16.msra.mxu2 %v921_v54 }
  0x61   : > { %641 = vmatpush.bf16.msra.mxu3 %v957_v11 }
  0x62   : > { %721 = vmatpush.bf16.msrb.mxu0 %v1045_v26 }
  0x63   : > { %560 = vmatpush.bf16.msra.mxu2 %v917_v57 }
  0x65   : > { %642 = vmatpush.bf16.msra.mxu3 %v953_v20 }
  0x66   : > { %722 = vmatpush.bf16.msrb.mxu0 %v1044_v27 }
  0x69   : > { %643 = vmatpush.bf16.msra.mxu3 %v949_v23 }
  0x6a   : > { %723 = vmatpush.bf16.msrb.mxu0 %v1043_v28 }
  0x6e   : > { %724 = vmatpush.bf16.msrb.mxu0 %v1042_v29 }
  0x72   : > { %725 = vmatpush.bf16.msrb.mxu0 %v1041_v36 }
  0x76   : > { %726 = vmatpush.bf16.msrb.mxu0 %v1040_v37 }
  0xc2   : > { %v396_v47 = vpop.f32.mrf.mxu0 }
  0xc3   : > { %v397_v48 = vadd.f32 %v1139_v46, %v396_v47 }
  0xc5   : > { %v400_v49 = vmax.f32 %v397_v48, 0.0 }
  0xc7   : > { %v418_v50 = vpack.c.bf16 %v400_v49, %v400_v49 }
  0xc9   : > { %478 = vmatmul.bf16.vlgmr.msra.gmra.mxu1 %v418_v50 }
  0xca   : > { %v398_v51 = vpop.f32.mrf.mxu0 }
 0x146   : > { %v479_v13 = vpop.f32.mrf.mxu1 }
 0x147   : > { %v480_v14 = vadd.f32 %v1140_v12, %v479_v13 }
 0x149   : > { %v483_v15 = vmax.f32 %v480_v14, 0.0 }
 0x14b   : > { %v501_v16 = vpack.c.bf16 %v483_v15, %v483_v15 }
 0x14d   : > { %561 = vmatmul.bf16.vlgmr.msra.gmra.mxu2 %v501_v16 }
 0x14e   : > { %v481_v17 = vpop.f32.mrf.mxu1 }
 0x1d0   : > { %v562_v31 = vpop.f32.mrf.mxu2 }
 0x1d1   : > { %v563_v32 = vadd.f32 %v1141_v30, %v562_v31 }
 0x1d3   : > { %v566_v33 = vmax.f32 %v563_v32, 0.0 }
 0x1d5   : > { %v584_v34 = vpack.c.bf16 %v566_v33, %v566_v33 }
 0x1d7   : > { %644 = vmatmul.bf16.vlgmr.msra.gmra.mxu3 %v584_v34 }
 0x1d8   : > { %v564_v35 = vpop.f32.mrf.mxu2 }
 0x25a   : > { %v645_v39 = vpop.f32.mrf.mxu3 }
 0x25b   : > { %v646_v40 = vadd.f32 %v1142_v38, %v645_v39 }
 0x25d   : > { %v649_v41 = vmax.f32 %v646_v40, 0.0 }
 0x25f   : > { %v650_v42 = vpack.c.bf16 %v649_v41, %v649_v41 }
 0x261   : > { %727 = vmatmul.bf16.vlgmr.msrb.gmra.mxu0 %v650_v42 }
 0x262   : > { %v647_v43 = vpop.f32.mrf.mxu3 }
 0x2de   : > { %v728_v45 = vpop.f32.mrf.mxu0 }
 0x2df   : > { %v729_v46 = vadd.f32 %v1143_v44, %v728_v45 }
 0x2e1   : > { %732 = vst [vmem:[%s359_s13] sm:$0xff] %v729_v46 }
 0x2e2   : > { %1321 = shalt.err (!%p1318_p9)
}
 0x2e3   : > { %1066 = dma.vmem_to_hbm [thread:$0]  (%p1505_p4), %s747_s1, 128, %s749_s2, %s734_s9  }
 0x2e6   : > { %v730_v47 = vpop.f32.mrf.mxu0 }
 0x2e7 PF: > { %s760_s18 = sand.u32 1, %s1356_s24   ;;  %p1620_p10 = scmp.ge.s32.totalorder %s1368_s27, 2 }
 0x2e8   : > { %s761_s29 = scalar_lea.sflag [#allocation4], %s760_s18 }
 0x2e9   : > { %p1086_p13 = pnand %p1620_p10, %p1509_p6 }
 0x2eb   : > { %p1087_p11 = pneg %p1086_p13 }
 0x2ed   : > { %1351 = dma.done.wait (%p1087_p11), %s761_s29, 128  }
 0x2ee   : > { %1353 = vsyncadd (%p1087_p11), %s761_s29, 4294967168  ;;  %p22_p0 = scmp.ge.s32.totalorder %s1479_s17, 4   ;;  %s1621_s24 = smov %s1360_s25 }
 0x2ef   : > { %s1622_s25 = smov %s1364_s26  ;;  %s1623_s26 = smov %s1490_s22 }
 0x2f0   : > { %s1624_s27 = smov %s1479_s17  ;;  %24 = sbr.rel (!%p22_p0) target bundleno = 10 (0xa), region = 109 }
 0x2f5   :  { %767 = vsyncpa [#allocation3], 1 }
 0x2f6   :  { %769 = vsyncpa [#allocation3 + $0x1], 1 }
 0x2f7   :  { %770 = vsyncpa [#allocation6], 1 }
 0x2f8   :  { %771 = vsyncpa [#allocation9], 1 }
 0x2f9   :  { %772 = vsyncpa [#allocation4], 1 }
 0x2fa   :  { %774 = vsyncpa [#allocation4 + $0x1], 1 }

</bundles_post_ra>
